<compile_context>
chip_gen: v5e
topology: v5e:2x2
jax: 0.10.0
libtpu: 0.0.40
codegen_flags: <defaults>
</compile_context>

<pallas_src>
import functools

import jax
import jax.numpy as jnp
from jax import lax
from jax.experimental import pallas as pl
from jax.experimental.pallas import tpu as pltpu


_LANES = 128
_SUBLANES = 8
# Keep the second-to-last block dim a multiple of 32 so the same tile is
# layout-legal for f32 (8-row tiles), bf16 (16) and int8 (32) operands.
_ROW_ALIGN = 32


def _tversky_sums_kernel(logits_ref, labels_ref, out_ref, *, needs_mask):
    """One (batch item, spatial tile) grid step.

    logits_ref : (1, C, s_tile, 128) native-dtype logits tile
    labels_ref : (1, s_tile, 128) int8/int32 class labels, -1 == padded pixel
    out_ref    : (1, 2, C, 8, 128) f32 resident accumulator block;
                 row 0 = intersection partials, row 1 = sum(p) partials
    """
    t_idx = pl.program_id(1)

    @pl.when(t_idx == 0)
    def _():
        out_ref[...] = jnp.zeros_like(out_ref)

    num_classes = logits_ref.shape[1]
    s = logits_ref.shape[2]
    nt = s // _SUBLANES

    # f32 compute; the reshape splits the sublane axis exactly on its natural
    # (8, 128) tile boundary, so it is a free retiling.
    x = logits_ref[0].astype(jnp.float32).reshape(
        num_classes, nt, _SUBLANES, _LANES)
    labels = labels_ref[0].astype(jnp.int32).reshape(nt, _SUBLANES, _LANES)

    if needs_mask:
        # Ragged / padded tail: select BEFORE exp so garbage in an
        # overhanging block can never turn into NaN/Inf.
        valid = labels >= 0
        x = jnp.where(valid[None], x, 0.0)

    # Softmax over the leading C axis: dense-vreg VPU work + exp on the EUP.
    m = jnp.max(x, axis=0)                             # (nt, 8, 128)
    e = jnp.exp(x - m[None])                           # (C, nt, 8, 128)
    sum_e = jnp.sum(e, axis=0)                         # (nt, 8, 128), >= 1
    denom_inv = pl.reciprocal(sum_e, approx=True)      # EUP vrcp slot
    if needs_mask:
        denom_inv = jnp.where(valid, denom_inv, 0.0)   # zero padded pixels
    p = e * denom_inv[None]                            # (C, nt, 8, 128)

    # Fused one-hot: single select instead of a materialised f32 one-hot + mul.
    cls = lax.broadcasted_iota(jnp.int32, (num_classes, nt, _SUBLANES, _LANES), 0)
    hit = labels[None] == cls

    # Per-step reduction only over the leading tile axis: pure vreg adds.
    out_ref[0, 0] += jnp.sum(jnp.where(hit, p, 0.0), axis=1)   # (C, 8, 128)
    out_ref[0, 1] += jnp.sum(p, axis=1)                        # (C, 8, 128)


def _choose_s_tile(num_rows, num_classes):
    """Rows (of 128 lanes) per grid step, budgeted for the kernel's live f32
    intermediates (~8 full-shape (C, s, 128) temps), not the input block, so
    per-step VMEM stays well under every generation's scoped limit."""
    f32_budget_bytes = 8 * 1024 * 1024
    live_temps = 8
    per_row = live_temps * num_classes * _LANES * 4
    s_tile = (f32_budget_bytes // per_row) // _ROW_ALIGN * _ROW_ALIGN
    s_tile = max(_ROW_ALIGN, s_tile)
    s_cap = max(_ROW_ALIGN, -(-num_rows // _ROW_ALIGN) * _ROW_ALIGN)
    return int(min(s_tile, s_cap))


def _to_labels(true, num_classes):
    """Accept [B,H,W] / [B,1,H,W] integer labels or [B,C,H,W] one-hot."""
    if true.ndim == 4:
        if true.shape[1] == 1:
            return true[:, 0].astype(jnp.int32)
        if true.shape[1] == num_classes:
            return jnp.argmax(true, axis=1).astype(jnp.int32)
    return true.astype(jnp.int32)


def tversky_loss(logits, true, weights, gamma,
                 alpha=0.7, beta=0.3, eps=1e-7, mean=False):
    """logits: [B, C, H, W]; true: integer labels [B, H, W] (or one-hot)."""
    B, C, H, W = logits.shape
    if C == 1:
        # TODO(synk): binary sigmoid path (num_classes == 1) not implemented.
        raise NotImplementedError("binary (num_classes == 1) path not implemented")

    HW = H * W
    labels = _to_labels(true, C).reshape(B, HW)          # (B, HW) int32

    # Per-class pixel counts (== sum of the one-hot target); tiny, outside
    # the kernel: fns = counts - intersection.
    counts = jnp.sum(
        (labels[..., None] == jnp.arange(C, dtype=jnp.int32)).astype(jnp.float32),
        axis=1)                                          # (B, C)

    # --- layout: [B, C, S_arr, 128] logits (native dtype, no f32 upcast in
    #     HBM), [B, T*s_tile, 128] int8 labels (-1 marks padded pixels). ---
    S = pl.cdiv(HW, _LANES)
    s_tile = _choose_s_tile(S, C)
    T = pl.cdiv(S, s_tile)

    # Logits: pad only when unavoidable -- (a) lane alignment (HW % 128 != 0),
    # or (b) the whole tensor fits a single tile (tiny, pad is negligible).
    # Large ragged tensors are NOT copied; the overhanging last block is
    # neutralised in-kernel via the label mask.
    S_arr = max(S, s_tile)
    row_pad = S_arr * _LANES - HW
    lg = logits.reshape(B, C, HW)
    if row_pad:
        lg = jnp.pad(lg, ((0, 0), (0, 0), (0, row_pad)))
    lg = lg.reshape(B, C, S_arr, _LANES)

    # Labels: always padded to the full tile extent (int8 -> ~1 byte/pixel).
    label_dtype = jnp.int8 if C <= 127 else jnp.int32
    full = T * s_tile * _LANES
    lb = labels.astype(label_dtype)
    if full != HW:
        lb = jnp.pad(lb, ((0, 0), (0, full - HW)), constant_values=-1)
    lb = lb.reshape(B, T * s_tile, _LANES)

    needs_mask = (full != HW)
    kernel = functools.partial(_tversky_sums_kernel, needs_mask=needs_mask)

    sums = pl.pallas_call(
        kernel,
        out_shape=jax.ShapeDtypeStruct((B, 2, C, _SUBLANES, _LANES), jnp.float32),
        grid_spec=pltpu.PrefetchScalarGridSpec(
            num_scalar_prefetch=0,
            grid=(B, T),
            in_specs=[
                pl.BlockSpec((1, C, s_tile, _LANES), lambda b, t: (b, 0, t, 0)),
                pl.BlockSpec((1, s_tile, _LANES), lambda b, t: (b, t, 0)),
            ],
            out_specs=pl.BlockSpec((1, 2, C, _SUBLANES, _LANES),
                                   lambda b, t: (b, 0, 0, 0, 0)),
        ),
        compiler_params=pltpu.CompilerParams(
            dimension_semantics=("parallel", "arbitrary"),
            vmem_limit_bytes=32 * 1024 * 1024),
    )(lg, lb)

    # --- tiny per-class combine (sublane + lane collapse) in plain JAX ---
    per_class = jnp.sum(sums, axis=(0, 3, 4))            # (2, C)
    intersection = per_class[0]
    p_sum = per_class[1]
    t_sum = jnp.sum(counts, axis=0)                      # (C,)
    fps = p_sum - intersection
    fns = t_sum - intersection

    num = intersection
    denom = intersection + alpha * fps + beta * fns
    tversky = (num + eps + 1.0) / (denom + eps + 1.0)

    weights = jnp.asarray(weights, dtype=jnp.float32)
    if weights.ndim == 0:
        # Matches the PyTorch module: scalar weights -> unweighted mean.
        return ((1.0 - tversky) ** gamma).mean()
    per_class_loss = (1.0 - tversky) ** gamma * weights
    return per_class_loss.mean() if mean else per_class_loss.sum()


if __name__ == "__main__":
    key = jax.random.PRNGKey(0)
    B, C, H, W = 2, 4, 16, 16

    k_logits, k_labels = jax.random.split(key)
    # Keep logits in bf16 (native model dtype) -- no wrapper f32 upcast.
    logits = jax.random.normal(k_logits, (B, C, H, W), dtype=jnp.float32)
    logits = logits.astype(jnp.bfloat16)

    labels = jax.random.randint(k_labels, (B, H, W), 0, C)

    # deterministic module parameters (self.gamma, self.weights)
    gamma = 0.75
    weights = jnp.array([0.4, 0.3, 0.2, 0.1], dtype=jnp.float32)

    loss = tversky_loss(logits, labels, weights, gamma,
                        alpha=0.7, beta=0.3, eps=1e-7, mean=False)
    jax.block_until_ready(loss)

    # pure-JAX reference check of the hot path (same bf16 inputs, f32 compute)
    probas = jax.nn.softmax(logits.astype(jnp.float32), axis=1)
    true_1hot = jnp.transpose(
        jax.nn.one_hot(labels, C, dtype=jnp.float32), (0, 3, 1, 2))
    inter_ref = jnp.sum(probas * true_1hot, axis=(0, 2, 3))
    fps_ref = jnp.sum(probas * (1 - true_1hot), axis=(0, 2, 3))
    fns_ref = jnp.sum((1 - probas) * true_1hot, axis=(0, 2, 3))
    tv_ref = (inter_ref + 1e-7 + 1.0) / (
        inter_ref + 0.7 * fps_ref + 0.3 * fns_ref + 1e-7 + 1.0)
    loss_ref = jnp.sum((1.0 - tv_ref) ** gamma * weights)
    # Tolerance covers the EUP approximate reciprocal (~2^-12 relative error).
    assert jnp.allclose(loss, loss_ref, rtol=1e-2, atol=1e-2), (loss, loss_ref)

    print("KERNEL_OK")
</pallas_src>

<mosaic_0001>
module attributes {stable_mosaic.version = 11 : i64} {
  func.func @_tversky_sums_kernel(%arg0: i32, %arg1: i32, %arg2: memref<1x4x32x128xbf16, #tpu.memory_space<vmem>>, %arg3: memref<1x32x128xi8, #tpu.memory_space<vmem>>, %arg4: memref<1x2x4x8x128xf32, #tpu.memory_space<vmem>>) attributes {dimension_semantics = [#tpu.dimension_semantics<parallel>, #tpu.dimension_semantics<arbitrary>], iteration_bounds = array<i64: 2, 1>, scalar_prefetch = 0 : i64, scratch_operands = 0 : i64, tpu.core_type = #tpu.core_type<tc>, window_params = [{transform_indices = @transform_0, window_bounds = array<i64: 1, 4, 32, 128>}, {transform_indices = @transform_1, window_bounds = array<i64: 1, 32, 128>}, {transform_indices = @transform_2, window_bounds = array<i64: 1, 2, 4, 8, 128>}]} {
    %c0_i32 = arith.constant 0 : i32
    %0 = arith.cmpi eq, %arg1, %c0_i32 : i32
    %1 = arith.extui %0 : i1 to i32
    %c0_i32_0 = arith.constant 0 : i32
    %2 = arith.cmpi ne, %1, %c0_i32_0 : i32
    scf.if %2 {
      %cst_33 = arith.constant 0.000000e+00 : f32
      %50 = vector.broadcast %cst_33 : f32 to vector<1x2x4x8x128xf32>
      %c0_34 = arith.constant 0 : index
      %c0_35 = arith.constant 0 : index
      %c0_36 = arith.constant 0 : index
      %c0_37 = arith.constant 0 : index
      %c0_38 = arith.constant 0 : index
      %51 = vector.load %arg4[%c0_34, %c0_35, %c0_36, %c0_37, %c0_38] : memref<1x2x4x8x128xf32, #tpu.memory_space<vmem>>, vector<1x2x4x8x128xf32>
      tpu.vector_store %arg4[%c0_34, %c0_35, %c0_36, %c0_37, %c0_38], %50 {strides = array<i32>} : memref<1x2x4x8x128xf32, #tpu.memory_space<vmem>>, vector<1x2x4x8x128xf32>,
    } else {
    }
    %c0 = arith.constant 0 : index
    %c0_1 = arith.constant 0 : index
    %c0_2 = arith.constant 0 : index
    %c0_3 = arith.constant 0 : index
    %3 = vector.load %arg2[%c0, %c0_1, %c0_2, %c0_3] : memref<1x4x32x128xbf16, #tpu.memory_space<vmem>>, vector<1x4x32x128xbf16>
    %4 = vector.shape_cast %3 : vector<1x4x32x128xbf16> to vector<4x32x128xbf16>
    %5 = arith.extf %4 : vector<4x32x128xbf16> to vector<4x32x128xf32>
    %6 = vector.shape_cast %5 : vector<4x32x128xf32> to vector<4x4x8x128xf32>
    %c0_4 = arith.constant 0 : index
    %c0_5 = arith.constant 0 : index
    %c0_6 = arith.constant 0 : index
    %7 = vector.load %arg3[%c0_4, %c0_5, %c0_6] : memref<1x32x128xi8, #tpu.memory_space<vmem>>, vector<1x32x128xi8>
    %8 = vector.shape_cast %7 : vector<1x32x128xi8> to vector<32x128xi8>
    %9 = arith.extsi %8 : vector<32x128xi8> to vector<32x128xi32>
    %10 = vector.shape_cast %9 : vector<32x128xi32> to vector<4x8x128xi32>
    %c0_i32_7 = arith.constant 0 : i32
    %11 = vector.broadcast %c0_i32_7 : i32 to vector<4x8x128xi32>
    %12 = arith.cmpi sge, %10, %11 : vector<4x8x128xi32>
    %13 = vector.shape_cast %12 : vector<4x8x128xi1> to vector<1x4x8x128xi1>
    %cst = arith.constant 0.000000e+00 : f32
    %14 = vector.shape_cast %13 : vector<1x4x8x128xi1> to vector<1x4x8x128xi1>
    %15 = vector.broadcast %14 : vector<1x4x8x128xi1> to vector<4x4x8x128xi1>
    %16 = vector.broadcast %cst : f32 to vector<4x4x8x128xf32>
    %17 = arith.select %15, %6, %16 : vector<4x4x8x128xi1>, vector<4x4x8x128xf32>
    %cst_8 = arith.constant dense<0xFF800000> : vector<4x8x128xf32>
    %18 = vector.multi_reduction <maximumf>, %17, %cst_8 [0] : vector<4x4x8x128xf32> to vector<4x8x128xf32>
    %19 = vector.shape_cast %18 : vector<4x8x128xf32> to vector<1x4x8x128xf32>
    %20 = vector.broadcast %19 : vector<1x4x8x128xf32> to vector<4x4x8x128xf32>
    %21 = arith.subf %17, %20 : vector<4x4x8x128xf32>
    %22 = math.exp %21 : vector<4x4x8x128xf32>
    %cst_9 = arith.constant dense<0.000000e+00> : vector<4x8x128xf32>
    %23 = vector.multi_reduction <add>, %22, %cst_9 [0] : vector<4x4x8x128xf32> to vector<4x8x128xf32>
    %24 = tpu.reciprocal %23 {approx = true} : vector<4x8x128xf32> -> vector<4x8x128xf32>
    %cst_10 = arith.constant 0.000000e+00 : f32
    %25 = vector.broadcast %cst_10 : f32 to vector<4x8x128xf32>
    %26 = arith.select %12, %24, %25 : vector<4x8x128xi1>, vector<4x8x128xf32>
    %27 = vector.shape_cast %26 : vector<4x8x128xf32> to vector<1x4x8x128xf32>
    %28 = vector.broadcast %27 : vector<1x4x8x128xf32> to vector<4x4x8x128xf32>
    %29 = arith.mulf %22, %28 : vector<4x4x8x128xf32>
    %30 = tpu.iota {dimensions = array<i32: 0>} : vector<4x4x8x128xi32>
    %31 = vector.shape_cast %10 : vector<4x8x128xi32> to vector<1x4x8x128xi32>
    %32 = vector.broadcast %31 : vector<1x4x8x128xi32> to vector<4x4x8x128xi32>
    %33 = arith.cmpi eq, %32, %30 : vector<4x4x8x128xi32>
    %c0_11 = arith.constant 0 : index
    %c0_12 = arith.constant 0 : index
    %c0_13 = arith.constant 0 : index
    %c0_14 = arith.constant 0 : index
    %c0_15 = arith.constant 0 : index
    %34 = vector.load %arg4[%c0_11, %c0_12, %c0_13, %c0_14, %c0_15] : memref<1x2x4x8x128xf32, #tpu.memory_space<vmem>>, vector<1x1x4x8x128xf32>
    %35 = vector.shape_cast %34 : vector<1x1x4x8x128xf32> to vector<4x8x128xf32>
    %cst_16 = arith.constant 0.000000e+00 : f32
    %36 = vector.broadcast %cst_16 : f32 to vector<4x4x8x128xf32>
    %37 = arith.select %33, %29, %36 : vector<4x4x8x128xi1>, vector<4x4x8x128xf32>
    %cst_17 = arith.constant dense<0.000000e+00> : vector<4x8x128xf32>
    %38 = vector.multi_reduction <add>, %37, %cst_17 [1] : vector<4x4x8x128xf32> to vector<4x8x128xf32>
    %39 = arith.addf %35, %38 : vector<4x8x128xf32>
    %c0_18 = arith.constant 0 : index
    %c0_19 = arith.constant 0 : index
    %c0_20 = arith.constant 0 : index
    %c0_21 = arith.constant 0 : index
    %c0_22 = arith.constant 0 : index
    %40 = vector.load %arg4[%c0_18, %c0_19, %c0_20, %c0_21, %c0_22] : memref<1x2x4x8x128xf32, #tpu.memory_space<vmem>>, vector<1x1x4x8x128xf32>
    %41 = vector.shape_cast %40 : vector<1x1x4x8x128xf32> to vector<4x8x128xf32>
    %42 = vector.shape_cast %39 : vector<4x8x128xf32> to vector<1x1x4x8x128xf32>
    tpu.vector_store %arg4[%c0_18, %c0_19, %c0_20, %c0_21, %c0_22], %42 {strides = array<i32>} : memref<1x2x4x8x128xf32, #tpu.memory_space<vmem>>, vector<1x1x4x8x128xf32>,
    %c0_23 = arith.constant 0 : index
    %c1 = arith.constant 1 : index
    %c0_24 = arith.constant 0 : index
    %c0_25 = arith.constant 0 : index
    %c0_26 = arith.constant 0 : index
    %43 = vector.load %arg4[%c0_23, %c1, %c0_24, %c0_25, %c0_26] : memref<1x2x4x8x128xf32, #tpu.memory_space<vmem>>, vector<1x1x4x8x128xf32>
    %44 = vector.shape_cast %43 : vector<1x1x4x8x128xf32> to vector<4x8x128xf32>
    %cst_27 = arith.constant dense<0.000000e+00> : vector<4x8x128xf32>
    %45 = vector.multi_reduction <add>, %29, %cst_27 [1] : vector<4x4x8x128xf32> to vector<4x8x128xf32>
    %46 = arith.addf %44, %45 : vector<4x8x128xf32>
    %c0_28 = arith.constant 0 : index
    %c1_29 = arith.constant 1 : index
    %c0_30 = arith.constant 0 : index
    %c0_31 = arith.constant 0 : index
    %c0_32 = arith.constant 0 : index
    %47 = vector.load %arg4[%c0_28, %c1_29, %c0_30, %c0_31, %c0_32] : memref<1x2x4x8x128xf32, #tpu.memory_space<vmem>>, vector<1x1x4x8x128xf32>
    %48 = vector.shape_cast %47 : vector<1x1x4x8x128xf32> to vector<4x8x128xf32>
    %49 = vector.shape_cast %46 : vector<4x8x128xf32> to vector<1x1x4x8x128xf32>
    tpu.vector_store %arg4[%c0_28, %c1_29, %c0_30, %c0_31, %c0_32], %49 {strides = array<i32>} : memref<1x2x4x8x128xf32, #tpu.memory_space<vmem>>, vector<1x1x4x8x128xf32>,
    return
  }
  func.func @transform_0(%arg0: i32, %arg1: i32) -> (i32, i32, i32, i32) {
    %c0_i32 = arith.constant 0 : i32
    %c0_i32_0 = arith.constant 0 : i32
    %c0_i32_1 = arith.constant 0 : i32
    return %arg0, %c0_i32, %arg1, %c0_i32_0 : i32, i32, i32, i32
  }
  func.func @transform_1(%arg0: i32, %arg1: i32) -> (i32, i32, i32) {
    %c0_i32 = arith.constant 0 : i32
    %c0_i32_0 = arith.constant 0 : i32
    return %arg0, %arg1, %c0_i32 : i32, i32, i32
  }
  func.func @transform_2(%arg0: i32, %arg1: i32) -> (i32, i32, i32, i32, i32) {
    %c0_i32 = arith.constant 0 : i32
    %c0_i32_0 = arith.constant 0 : i32
    %c0_i32_1 = arith.constant 0 : i32
    %c0_i32_2 = arith.constant 0 : i32
    %c0_i32_3 = arith.constant 0 : i32
    return %arg0, %c0_i32, %c0_i32_0, %c0_i32_1, %c0_i32_2 : i32, i32, i32, i32, i32
  }
}

</mosaic_0001>

<bundles_post_ra>
// kernel: tpu_custom_call.1
= control target key start
LH: loop header
LB: loop body
LE: loop exit
PB: predicated region body
PF: predicated region fallthrough
CT: control target
= control target key end

     0   :  { %7 = vsyncpa [#allocation3], 0  ;;  %s1221_s0 = inlined_call_operand.hbm [shape: bf16[2,4,32,128], index: 0, kind: input, shape index: {}]   ;;  %s1222_s1 = inlined_call_operand.hbm [shape: s8[2,32,128], index: 1, kind: input, shape index: {}]   ;;  %s1223_s2 = inlined_call_operand.hbm [shape: f32[2,2,4,8,128], index: 2, kind: output, shape index: {}]  }
   0x1   :  { %9 = vsyncpa [#allocation3 + $0x1], 0 }
   0x2   :  { %10 = vsyncpa [#allocation6], 0 }
   0x3   :  { %12 = vsyncpa [#allocation6 + $0x1], 0 }
   0x4   :  { %13 = vsyncpa [#allocation4], 0 }
   0x5   :  { %15 = vsyncpa [#allocation4 + $0x1], 0  ;;  %s947_s9 = smov 0   ;;  %s949_s10 = smov 0  }
   0x6   :  { %s951_s11 = smov 0   ;;  %s953_s12 = smov 0  }
   0x7   :  { %s955_s13 = smov 0   ;;  %s957_s14 = smov 0  }
   0x8 LB: > { %s601_s15 = sadd.s32 4294967295, %s926_s14   ;;  %s602_s16 = sadd.s32 4294967294, %s926_s14   ;;  %s926_s14 = sphi %s957_s14, %s21_s14   ;;  %s922_s13 = sphi %s955_s13, %s1237_s13   ;;  %s918_s12 = sphi %s953_s12, %s1236_s12   ;;  %s914_s11 = sphi %s951_s11, %s1235_s11   ;;  %s910_s10 = sphi %s949_s10, %s1234_s10   ;;  %s906_s9 = sphi %s947_s9, %s1233_s9  }
   0x9   : > { %s33_s17 = sadd.s32 1, %s922_s13  ;;  %s42_s18 = sadd.s32 1, %s914_s11 }
   0xa   : > { %p35_p0 = scmp.ge.s32.totalorder %s33_s17, 2  ;;  %p49_p1 = scmp.ne.s32.totalorder %s914_s11, %s910_s10 }
   0xb   : > { %p50_p2 = scmp.eq.s32.totalorder %s926_s14, 0  ;;  %p55_p3 = scmp.ne.s32.totalorder %s910_s10, %s906_s9 }
   0xc   : > { %s1239_s17 = smov (%p35_p0, %s33_s17), 0  ;;  %p56_p5 = scmp.eq.s32.totalorder %s601_s15, 0 }
   0xd   : > { %p988_p4 = por %p50_p2, %p49_p1  ;;  %s37_s20 = ssub.s32 %s922_s13, %s1239_s17 }
   0xe   : > { %p107_p6 = scmp.eq.s32.totalorder %s601_s15, 1  ;;  %p40_p7 = scmp.eq.s32.totalorder %s37_s20, 0 }
   0xf   : > { %p994_p8 = por %p56_p5, %p55_p3  ;;  %p113_p10 = scmp.eq.s32.totalorder %s602_s16, 1 }
  0x10   : > { %p998_p9 = por %p107_p6, %p49_p1  ;;  %p604_p12 = scmp.ge.s32.totalorder %s926_s14, 2 }
  0x11   : > { %s1003_s23 = scalar_select %p40_p7, %s914_s11, %s42_s18  }
  0x12   : > { %p1005_p11 = por %p113_p10, %p55_p3  ;;  %p685_p13 = scmp.lt.s32.totalorder %s926_s14, 2 }
  0x13   : > { %s133_s25 = sand.u32 1, %s914_s11   ;;  %s627_s27 = sshll.u32 %s922_s13, 6 }
  0x14   : > { %s605_s26 = sshll.u32 %s133_s25, 6  ;;  %s144_s30 = scalar_lea.hbm %s1221_s0, %s627_s27 }
  0x15   : > { %s137_s3 = scalar_lea.vmem [#allocation2], %s605_s26  ;;  %s145_s5 = sshll.u32 %s144_s30, 4  ;;  %s146_s5 = int_to_ptr.hbm [resolvable:$true] %s145_s5 }
  0x16   : > { %s147_s4 = sshll.u32 %s137_s3, 4  ;;  %p1018_p0 = pnand %p685_p13, %p988_p4  ;;  %s148_s4 = int_to_ptr.vmem [resolvable:$true] %s147_s4 }
  0x17   : > { %p610_p1 = scmp.ge.s32.totalorder %s926_s14, 1  ;;  %s134_s7 = scalar_lea.sflag [#allocation3], %s133_s25 }
  0x18   : > { %s928_s8 = smov 64   ;;  %s929_s15 = smov 4  }
  0x19   : > { %677 = dma.hbm_to_vmem [thread:$0]  (!%p1018_p0), %s146_s5, 1024, %s148_s4, %s134_s7, %s928_s8, %s928_s8, %s929_s15  }
  0x1a   : > { %p175_p2 = scmp.lt.s32.totalorder %s926_s14, 3  ;;  %s608_s16 = sshll.u32 %s133_s25, 3 }
  0x1b   : > { %s609_s18 = sshll.u32 %s922_s13, 3  ;;  %s161_s27 = scalar_lea.vmem [#allocation5], %s608_s16 }
  0x1c   : > { %p176_p3 = pnand %p610_p1, %p175_p2  ;;  %s166_s19 = scalar_lea.hbm %s1222_s1, %s609_s18 }
  0x1d   : > { %s170_s28 = sshll.u32 %s161_s27, 4  ;;  %s168_s29 = sshll.u32 %s166_s19, 4  ;;  %s171_s28 = int_to_ptr.vmem [resolvable:$true] %s170_s28  ;;  %s169_s29 = int_to_ptr.hbm [resolvable:$true] %s168_s29 }
  0x1e   : > { %s158_s30 = scalar_lea.sflag [#allocation6], %s133_s25  ;;  %179 = sbr.rel (%p176_p3) target bundleno = 112 (0x70), region = 28 }
  0x1f   : > { %680 = dma.hbm_to_vmem [thread:$0]  (!%p1018_p0), %s169_s29, 128, %s171_s28, %s158_s30  }
  0x20   : > { %s1033_s3 = sand.u32 (!%p176_p3), 1, %s910_s10  }
  0x21   : > { %s611_s4 = sshll.u32 (!%p176_p3), %s1033_s3, 6  ;;  %s182_s5 = scalar_lea.sflag (!%p176_p3), [#allocation3], %s1033_s3 }
  0x22   : > { %s185_s7 = scalar_lea.vmem (!%p176_p3), [#allocation2], %s611_s4 }
  0x23   : > { %893 = dma.done.wait (%p994_p8), %s182_s5, 1024  }
  0x24   : > { %895 = vsyncadd (%p994_p8), %s182_s5, 4294966272  ;;  %s612_s25 = sshll.u32 %s1033_s3, 3  ;;  %s192_s6 = scalar_lea.sflag [#allocation6], %s1033_s3 }
  0x25   : > { %s195_s8 = scalar_lea.vmem [#allocation5], %s612_s25 }
  0x26   : > { %897 = dma.done.wait (%p994_p8), %s192_s6, 128  }
  0x27   : > { %899 = vsyncadd (%p994_p8), %s192_s6, 4294967168  ;;  %v630_v0 = vld [vmem:[%s185_s7] sm:$0xff]   ;;  %v661_v1 = vld [vmem:[%s185_s7 + $0x8] sm:$0xff]   ;;  %s628_s21 = sshll.u32 %s918_s12, 6  ;;  %s221_s15 = scalar_lea.vmem [#allocation7], %s611_s4 }
  0x28   : > { %v662_v2 = vld [vmem:[%s185_s7 + $0x10] sm:$0xff]   ;;  %v663_v3 = vld [vmem:[%s185_s7 + $0x18] sm:$0xff]   ;;  %v664_v4 = vld [vmem:[%s185_s7 + $0x20] sm:$0xff]   ;;  %v631_v6 = vunpack.c.l.bf16 %v630_v0  ;;  %v632_v7 = vunpack.c.h.bf16 %v630_v0  ;;  %v635_v8 = vunpack.c.l.bf16 %v661_v1  ;;  %v636_v9 = vunpack.c.h.bf16 %v661_v1  ;;  %s489_s20 = scalar_lea.hbm %s1223_s2, %s628_s21  ;;  %s490_s12 = sshll.u32 %s221_s15, 4  ;;  %s491_s12 = int_to_ptr.vmem [resolvable:$true] %s490_s12 }
  0x29   : > { %v665_v5 = vld [vmem:[%s185_s7 + $0x28] sm:$0xff]   ;;  %v639_v11 = vunpack.c.l.bf16 %v662_v2  ;;  %v640_v12 = vunpack.c.h.bf16 %v662_v2  ;;  %v643_v13 = vunpack.c.l.bf16 %v663_v3  ;;  %v644_v14 = vunpack.c.h.bf16 %v663_v3  ;;  %v666_v15 = vld [vmem:[%s185_s7 + $0x30] sm:$0xff]   ;;  %v667_v16 = vld [vmem:[%s185_s7 + $0x38] sm:$0xff]   ;;  %s492_s26 = sshll.u32 %s489_s20, 4  ;;  %s478_s19 = scalar_lea.sflag [#allocation4], %s1033_s3  ;;  %s493_s26 = int_to_ptr.hbm [resolvable:$true] %s492_s26 }
  0x2a   : > { %v267_v10 = vld [vmem:[%s195_s8] sm:$0xff]  ;;  %v647_v17 = vunpack.c.l.bf16 %v664_v4  ;;  %v648_v18 = vunpack.c.h.bf16 %v664_v4  ;;  %v651_v19 = vunpack.c.l.bf16 %v665_v5  ;;  %v652_v20 = vunpack.c.h.bf16 %v665_v5  ;;  %s854_s27 = sshra.s32 %s493_s26, 4  ;;  %s860_s4 = scalar_lea.hbm %s1223_s2, 128  ;;  %s855_s27 = int_to_ptr.hbm [resolvable:$true] %s854_s27 }
  0x2b   : > { %v1049_v21 = vunpack.c.0.s8 %v267_v10  ;;  %v1051_v22 = vunpack.c.1.s8 %v267_v10  ;;  %v1053_v23 = vunpack.c.2.s8 %v267_v10  ;;  %v1055_v24 = vunpack.c.3.s8 %v267_v10  ;;  %s856_s28 = scalar_lea.hbm %s855_s27, 64  ;;  %p861_p7 = scmp.lt.s32.totalorder %s855_s27, %s1223_s2 }
  0x2c   : > { %v655_v25 = vunpack.c.l.bf16 %v666_v15  ;;  %v656_v26 = vunpack.c.h.bf16 %v666_v15  ;;  %v659_v27 = vunpack.c.l.bf16 %v667_v16  ;;  %v660_v28 = vunpack.c.h.bf16 %v667_v16  ;;  %p857_p4 = scmp.ne.s32.totalorder %s855_s27, %s856_s28  ;;  %p862_p8 = scmp.lt.s32.totalorder %s860_s4, %s856_s28 }
  0x2d   : > { %vm272_vm0 = vcmp.ge.s32.totalorder %v1049_v21, 0  ;;  %vm273_vm1 = vcmp.ge.s32.totalorder %v1051_v22, 0  ;;  %vm274_vm2 = vcmp.ge.s32.totalorder %v1053_v23, 0  ;;  %vm275_vm3 = vcmp.ge.s32.totalorder %v1055_v24, 0 }
  0x2e   : > { %v284_v29 = vsel %vm272_vm0, %v631_v6, 0.0  ;;  %v285_v30 = vsel %vm273_vm1, %v632_v7, 0.0  ;;  %v286_v31 = vsel %vm274_vm2, %v635_v8, 0.0  ;;  %v287_v32 = vsel %vm275_vm3, %v636_v9, 0.0  ;;  %p858_p5 = pnand %p857_p4, %p998_p9  ;;  %p863_p10 = por %p862_p8, %p861_p7 }
  0x2f   : > { %v288_v33 = vsel %vm272_vm0, %v639_v11, 0.0  ;;  %v289_v34 = vsel %vm273_vm1, %v640_v12, 0.0  ;;  %v290_v35 = vsel %vm274_vm2, %v643_v13, 0.0  ;;  %v291_v36 = vsel %vm275_vm3, %v644_v14, 0.0 }
  0x30   : > { %v292_v37 = vsel %vm272_vm0, %v647_v17, 0.0  ;;  %v293_v38 = vsel %vm273_vm1, %v648_v18, 0.0  ;;  %v294_v39 = vsel %vm274_vm2, %v651_v19, 0.0  ;;  %v295_v40 = vsel %vm275_vm3, %v652_v20, 0.0  ;;  %p859_p6 = pneg %p858_p5 }
  0x31   : > { %v300_v41 = vmax.f32 %v284_v29, %v288_v33  ;;  %v303_v42 = vmax.f32 %v285_v30, %v289_v34  ;;  %v306_v43 = vmax.f32 %v286_v31, %v290_v35  ;;  %v309_v44 = vmax.f32 %v287_v32, %v291_v36 }
  0x32   : > { %v296_v45 = vsel %vm272_vm0, %v655_v25, 0.0  ;;  %v297_v46 = vsel %vm273_vm1, %v656_v26, 0.0  ;;  %v298_v47 = vsel %vm274_vm2, %v659_v27, 0.0  ;;  %v299_v48 = vsel %vm275_vm3, %v660_v28, 0.0  ;;  %p864_p13 = pnand %p863_p10, %p859_p6 }
  0x33   : > { %v301_v49 = vmax.f32 %v300_v41, %v292_v37  ;;  %v304_v50 = vmax.f32 %v303_v42, %v293_v38  ;;  %v307_v51 = vmax.f32 %v306_v43, %v294_v39  ;;  %v310_v52 = vmax.f32 %v309_v44, %v295_v40 }
  0x34   : > { %vm396_vm4 = vcmp.eq.s32.totalorder %v1049_v21, 0  ;;  %vm397_vm5 = vcmp.eq.s32.totalorder %v1051_v22, 0  ;;  %vm398_vm6 = vcmp.eq.s32.totalorder %v1053_v23, 0  ;;  %vm400_vm8 = vcmp.eq.s32.totalorder %v1049_v21, 1 }
  0x35   : > { %v302_v53 = vmax.f32 %v301_v49, %v296_v45  ;;  %v305_v54 = vmax.f32 %v304_v50, %v297_v46  ;;  %v308_v55 = vmax.f32 %v307_v51, %v298_v47  ;;  %v311_v56 = vmax.f32 %v310_v52, %v299_v48 }
  0x36   : > { %vm403_vm11 = vcmp.eq.s32.totalorder %v1055_v24, 1  ;;  %vm404_vm12 = vcmp.eq.s32.totalorder %v1049_v21, 2  ;;  %vm405_vm13 = vcmp.eq.s32.totalorder %v1051_v22, 2  ;;  %vm406_vm14 = vcmp.eq.s32.totalorder %v1053_v23, 2 }
  0x37   : > { %v312_v57 = vsub.f32 %v284_v29, %v302_v53  ;;  %v313_v58 = vsub.f32 %v285_v30, %v305_v54  ;;  %v314_v59 = vsub.f32 %v286_v31, %v308_v55  ;;  %v315_v60 = vsub.f32 %v287_v32, %v311_v56 }
  0x38   : > { %v316_v61 = vsub.f32 %v288_v33, %v302_v53  ;;  %v317_v62 = vsub.f32 %v289_v34, %v305_v54  ;;  %v318_v63 = vsub.f32 %v290_v35, %v308_v55  ;;  %v319_v3 = vsub.f32 %v291_v36, %v311_v56 }
  0x39   : > { %v328_v0 = vmul.f32 1.442695, %v312_v57  ;;  %v330_v1 = vmul.f32 1.442695, %v313_v58  ;;  %v332_v2 = vmul.f32 1.442695, %v314_v59  ;;  %v320_v5 = vsub.f32 %v292_v37, %v302_v53 }
  0x3a   : > { %v334_v4 = vmul.f32 1.442695, %v315_v60  ;;  %v336_v6 = vmul.f32 1.442695, %v316_v61  ;;  %v321_v7 = vsub.f32 %v293_v38, %v305_v54  ;;  %v338_v8 = vmul.f32 1.442695, %v317_v62 }
  0x3b   : > { %740 = vpow2.f32 %v328_v0  ;;  %v322_v9 = vsub.f32 %v294_v39, %v308_v55  ;;  %v340_v10 = vmul.f32 1.442695, %v318_v63  ;;  %v323_v11 = vsub.f32 %v295_v40, %v311_v56 }
  0x3c   : > { %742 = vpow2.f32 %v330_v1  ;;  %v342_v12 = vmul.f32 1.442695, %v319_v3  ;;  %v324_v13 = vsub.f32 %v296_v45, %v302_v53  ;;  %v344_v14 = vmul.f32 1.442695, %v320_v5 }
  0x3d   : > { %744 = vpow2.f32 %v332_v2  ;;  %v325_v15 = vsub.f32 %v297_v46, %v305_v54  ;;  %v346_v16 = vmul.f32 1.442695, %v321_v7  ;;  %v326_v18 = vsub.f32 %v298_v47, %v308_v55 }
  0x3e   : > { %746 = vpow2.f32 %v334_v4  ;;  %v348_v19 = vmul.f32 1.442695, %v322_v9  ;;  %v327_v25 = vsub.f32 %v299_v48, %v311_v56  ;;  %v350_v26 = vmul.f32 1.442695, %v323_v11 }
  0x3f   : > { %748 = vpow2.f32 %v336_v6  ;;  %v352_v28 = vmul.f32 1.442695, %v324_v13  ;;  %v354_v30 = vmul.f32 1.442695, %v325_v15  ;;  %v356_v32 = vmul.f32 1.442695, %v326_v18 }
  0x40   : > { %750 = vpow2.f32 %v338_v8  ;;  %v358_v34 = vmul.f32 1.442695, %v327_v25  ;;  %vm408_vm7 = vcmp.eq.s32.totalorder %v1049_v21, 3  ;;  %vm409_vm9 = vcmp.eq.s32.totalorder %v1051_v22, 3 }
  0x41   : > { %v1093_v17 = vpop.eup %740  ;;  %752 = vpow2.f32 %v340_v10  ;;  %vm410_vm10 = vcmp.eq.s32.totalorder %v1053_v23, 3  ;;  %vm411_vm15 = vcmp.eq.s32.totalorder %v1055_v24, 3 }
  0x42   : > { %v1095_v20 = vpop.eup %742  ;;  %754 = vpow2.f32 %v342_v12 }
  0x43   : > { %v1097_v27 = vpop.eup %744  ;;  %756 = vpow2.f32 %v344_v14 }
  0x44   : > { %v1099_v29 = vpop.eup %746  ;;  %758 = vpow2.f32 %v346_v16 }
  0x45   : > { %v749_v31 = vpop.eup %748  ;;  %760 = vpow2.f32 %v348_v19 }
  0x46   : > { %v751_v33 = vpop.eup %750  ;;  %762 = vpow2.f32 %v350_v26  ;;  %v360_v35 = vadd.f32 %v749_v31, %v1093_v17 }
  0x47   : > { %v753_v36 = vpop.eup %752  ;;  %764 = vpow2.f32 %v352_v28  ;;  %v363_v37 = vadd.f32 %v751_v33, %v1095_v20 }
  0x48   : > { %v755_v38 = vpop.eup %754  ;;  %766 = vpow2.f32 %v354_v30  ;;  %v366_v39 = vadd.f32 %v753_v36, %v1097_v27 }
  0x49   : > { %v757_v40 = vpop.eup %756  ;;  %768 = vpow2.f32 %v356_v32  ;;  %v369_v41 = vadd.f32 %v755_v38, %v1099_v29 }
  0x4a   : > { %v759_v42 = vpop.eup %758  ;;  %770 = vpow2.f32 %v358_v34  ;;  %v361_v43 = vadd.f32 %v757_v40, %v360_v35 }
  0x4b   : > { %v761_v44 = vpop.eup %760  ;;  %v364_v45 = vadd.f32 %v759_v42, %v363_v37 }
  0x4c   : > { %v763_v46 = vpop.eup %762  ;;  %v367_v47 = vadd.f32 %v761_v44, %v366_v39 }
  0x4d   : > { %v1105_v48 = vpop.eup %764  ;;  %v370_v49 = vadd.f32 %v763_v46, %v369_v41 }
  0x4e   : > { %v1107_v50 = vpop.eup %766  ;;  %v362_v51 = vadd.f32 %v1105_v48, %v361_v43 }
  0x4f   : > { %v1110_v52 = vpop.eup %768  ;;  %v365_v53 = vadd.f32 %v1107_v50, %v364_v45 }
  0x50   : > { %v1113_v54 = vpop.eup %770  ;;  %v368_v55 = vadd.f32 %v1110_v52, %v367_v47  ;;  %772 = vrcp.f32 %v362_v51 }
  0x51   : > { %v371_v56 = vadd.f32 %v1113_v54, %v370_v49  ;;  %774 = vrcp.f32 %v365_v53 }
  0x52   : > { %776 = vrcp.f32 %v368_v55 }
  0x53   : > { %778 = vrcp.f32 %v371_v56 }
  0x56   : > { %v773_v57 = vpop.eup %772 }
  0x57   : > { %v775_v58 = vpop.eup %774  ;;  %v376_v59 = vsel %vm272_vm0, %v773_v57, 0.0  ;;  %vm1229_vm0 = vcmp.eq.s32.totalorder %v1051_v22, 1 }
  0x58   : > { %v777_v60 = vpop.eup %776  ;;  %v377_v61 = vsel %vm273_vm1, %v775_v58, 0.0  ;;  %v380_v62 = vmul.f32 %v1093_v17, %v376_v59  ;;  %v384_v63 = vmul.f32 %v749_v31, %v376_v59  ;;  %v388_v0 = vmul.f32 %v757_v40, %v376_v59 }
  0x59   : > { %v779_v1 = vpop.eup %778  ;;  %v378_v2 = vsel %vm274_vm2, %v777_v60, 0.0  ;;  %v381_v3 = vmul.f32 %v1095_v20, %v377_v61  ;;  %v385_v4 = vmul.f32 %v751_v33, %v377_v61  ;;  %v389_v5 = vmul.f32 %v759_v42, %v377_v61 }
  0x5a   : > { %v379_v6 = vsel %vm275_vm3, %v779_v1, 0.0  ;;  %v382_v7 = vmul.f32 %v1097_v27, %v378_v2  ;;  %v416_v8 = vsel %vm396_vm4, %v380_v62, 0.0  ;;  %v386_v9 = vmul.f32 %v753_v36, %v378_v2 }
  0x5b   : > { %v383_v10 = vmul.f32 %v1099_v29, %v379_v6  ;;  %v417_v11 = vsel %vm397_vm5, %v381_v3, 0.0  ;;  %v387_v12 = vmul.f32 %v755_v38, %v379_v6  ;;  %v420_v13 = vsel %vm400_vm8, %v384_v63, 0.0 }
  0x5c   : > { %v418_v14 = vsel %vm398_vm6, %v382_v7, 0.0  ;;  %v432_v15 = vadd.f32 %v417_v11, %v416_v8  ;;  %v421_v16 = vsel %vm1229_vm0, %v385_v4, 0.0  ;;  %vm1230_vm1 = vcmp.eq.s32.totalorder %v1053_v23, 1 }
  0x5d   : > { %v422_v17 = vsel %vm1230_vm1, %v386_v9, 0.0  ;;  %vm1231_vm2 = vcmp.eq.s32.totalorder %v1055_v24, 0  ;;  %v423_v19 = vsel %vm403_vm11, %v387_v12, 0.0  ;;  %v435_v20 = vadd.f32 %v421_v16, %v420_v13 }
  0x5e   : > { %v419_v18 = vsel %vm1231_vm2, %v383_v10, 0.0  ;;  %v390_v25 = vmul.f32 %v761_v44, %v378_v2  ;;  %v433_v26 = vadd.f32 %v432_v15, %v418_v14  ;;  %v391_v27 = vmul.f32 %v763_v46, %v379_v6 }
  0x5f   : > { %v424_v28 = vsel %vm404_vm12, %v388_v0, 0.0  ;;  %v425_v29 = vsel %vm405_vm13, %v389_v5, 0.0  ;;  %v436_v30 = vadd.f32 %v435_v20, %v422_v17  ;;  %v392_v33 = vmul.f32 %v1105_v48, %v376_v59 }
  0x60   : > { %v426_v31 = vsel %vm406_vm14, %v390_v25, 0.0  ;;  %v438_v32 = vadd.f32 %v425_v29, %v424_v28  ;;  %v434_v34 = vadd.f32 %v433_v26, %v419_v18  ;;  %vm1232_vm3 = vcmp.eq.s32.totalorder %v1055_v24, 2 }
  0x61   : > { %v427_v35 = vsel %vm1232_vm3, %v391_v27, 0.0  ;;  %v393_v36 = vmul.f32 %v1107_v50, %v377_v61  ;;  %v394_v37 = vmul.f32 %v1110_v52, %v378_v2  ;;  %v437_v38 = vadd.f32 %v436_v30, %v423_v19 }
  0x62   : > { %v439_v39 = vadd.f32 %v438_v32, %v426_v31  ;;  %v395_v40 = vmul.f32 %v1113_v54, %v379_v6  ;;  %v428_v41 = vsel %vm408_vm7, %v392_v33, 0.0  ;;  %v457_v44 = vadd.f32 %v381_v3, %v380_v62  ;;  %448 = vst [vmem:[%s221_s15] sm:$0xff] %v434_v34 }
  0x63   : > { %v429_v42 = vsel %vm409_vm9, %v393_v36, 0.0  ;;  %v430_v43 = vsel %vm410_vm10, %v394_v37, 0.0  ;;  %v460_v49 = vadd.f32 %v385_v4, %v384_v63  ;;  %v463_v21 = vadd.f32 %v389_v5, %v388_v0  ;;  %449 = vst [vmem:[%s221_s15 + $0x8] sm:$0xff] %v437_v38 }
  0x64   : > { %v440_v45 = vadd.f32 %v439_v39, %v427_v35  ;;  %v431_v46 = vsel %vm411_vm15, %v395_v40, 0.0  ;;  %v441_v47 = vadd.f32 %v429_v42, %v428_v41  ;;  %v458_v48 = vadd.f32 %v457_v44, %v382_v7 }
  0x65   : > { %v466_v50 = vadd.f32 %v393_v36, %v392_v33  ;;  %v461_v52 = vadd.f32 %v460_v49, %v386_v9  ;;  %v464_v23 = vadd.f32 %v463_v21, %v390_v25 }
  0x66   : > { %v442_v22 = vadd.f32 %v441_v47, %v430_v43  ;;  %v459_v51 = vadd.f32 %v458_v48, %v383_v10  ;;  %450 = vst [vmem:[%s221_s15 + $0x10] sm:$0xff] %v440_v45 }
  0x67   : > { %v467_v53 = vadd.f32 %v466_v50, %v394_v37  ;;  %v462_v54 = vadd.f32 %v461_v52, %v387_v12  ;;  %v465_v55 = vadd.f32 %v464_v23, %v391_v27 }
  0x68   : > { %v443_v24 = vadd.f32 %v442_v22, %v431_v46  ;;  %618 = vst [vmem:[%s221_s15 + $0x20] sm:$0xff] %v459_v51 }
  0x69   : > { %v468_v56 = vadd.f32 %v467_v53, %v395_v40  ;;  %619 = vst [vmem:[%s221_s15 + $0x28] sm:$0xff] %v462_v54 }
  0x6a   : > { %451 = vst [vmem:[%s221_s15 + $0x18] sm:$0xff] %v443_v24 }
  0x6b   : > { %620 = vst [vmem:[%s221_s15 + $0x30] sm:$0xff] %v465_v55 }
  0x6c   : > { %621 = vst [vmem:[%s221_s15 + $0x38] sm:$0xff] %v468_v56 }
  0x6d   : > { %867 = shalt.err (!%p864_p13)
}
  0x6e   : > { %s930_s3 = smov 128   ;;  %s931_s25 = smov 8  }
  0x6f   : > { %672 = dma.vmem_to_hbm [thread:$0]  (%p998_p9), %s491_s12, 1024, %s493_s26, %s478_s19, %s930_s3, %s930_s3, %s931_s25  }
  0x70 PF: > { %s507_s6 = sand.u32 1, %s906_s9   ;;  %p682_p0 = pnand %p604_p12, %p1005_p11 }
  0x71   : > { %s508_s8 = scalar_lea.sflag [#allocation4], %s507_s6 }
  0x72   : > { %p683_p1 = pneg %p682_p0 }
  0x74   : > { %901 = dma.done.wait (%p683_p1), %s508_s8, 1024  }
  0x75   : > { %903 = vsyncadd (%p683_p1), %s508_s8, 4294966272  ;;  %s21_s14 = sadd.s32 1, %s926_s14   ;;  %s1233_s9 = smov %s910_s10 }
  0x76   : > { %p18_p2 = scmp.ge.s32.totalorder %s21_s14, 4   ;;  %s1234_s10 = smov %s914_s11 }
  0x77   : > { %s1235_s11 = smov %s1003_s23  ;;  %s1236_s12 = smov %s922_s13 }
  0x78   : > { %s1237_s13 = smov %s1239_s17  ;;  %20 = sbr.rel (!%p18_p2) target bundleno = 8 (0x8), region = 91 }
  0x7d   :  { %514 = vsyncpa [#allocation3], 1 }
  0x7e   :  { %516 = vsyncpa [#allocation3 + $0x1], 1 }
  0x7f   :  { %517 = vsyncpa [#allocation6], 1 }
  0x80   :  { %519 = vsyncpa [#allocation6 + $0x1], 1 }
  0x81   :  { %520 = vsyncpa [#allocation4], 1 }
  0x82   :  { %522 = vsyncpa [#allocation4 + $0x1], 1 }

</bundles_post_ra>
